<compile_context>
chip_gen: v7x
topology: tpu7x:2x2x1
jax: 0.10.0
libtpu: 0.0.40
codegen_flags: <defaults>
</compile_context>

<pallas_src>
import jax
import jax.numpy as jnp
from jax.experimental import pallas as pl
from jax.experimental.pallas import tpu as pltpu


def _dma_copy_kernel(x_hbm_ref, o_hbm_ref, sem):
    # Whole-array HBM->HBM DMA: no VMEM staging, no grid steps, no TC work.
    copy = pltpu.make_async_copy(x_hbm_ref, o_hbm_ref, sem)
    copy.start()
    copy.wait()


@jax.jit
def _pallas_identity_template(x: jax.Array) -> jax.Array:
    """Pallas template for subclasses: one whole-array async DMA copy."""
    return pl.pallas_call(
        _dma_copy_kernel,
        out_shape=jax.ShapeDtypeStruct(x.shape, x.dtype),
        in_specs=[pl.BlockSpec(memory_space=pl.ANY)],
        out_specs=pl.BlockSpec(memory_space=pl.ANY),
        scratch_shapes=[pltpu.SemaphoreType.DMA],
    )(x)


# ----------------------------------------------------------------------------
# JAX-side mirror of the PyTorch module.
# ----------------------------------------------------------------------------
class BaseDecoder:
    """Base decoder class (JAX/Pallas mirror of the PyTorch nn.Module).

    No parameters are defined in __init__ (matching the reference), and
    forward raises NotImplementedError exactly like the PyTorch version.
    """

    def __init__(self):
        # Reference __init__ only calls super().__init__(); nothing to init.
        pass

    def forward(self, *args, **kwargs):
        # TODO(synk): forward is abstract in the reference; no decoder math
        # exists to implement here.
        raise NotImplementedError('Forward method not implemented')

    def __call__(self, *args, **kwargs):
        return self.forward(*args, **kwargs)

    # Optimal identity pass-through: return x — zero HBM traffic, zero grid
    # and DMA overhead (per the performance review, the best identity is free).
    @staticmethod
    def _stub_pass_through(x: jax.Array) -> jax.Array:
        return x

    # Pallas kernel template retained purely so subclasses have working
    # pallas_call plumbing (manual-DMA pattern) to build real decoders on.
    @staticmethod
    def _pallas_template(x: jax.Array) -> jax.Array:
        return _pallas_identity_template(x)


if __name__ == "__main__":
    key = jax.random.PRNGKey(0)
    # Small decoder-style input, NCHW as PyTorch would feed a decoder stack.
    x = jax.random.normal(key, (2, 4, 16, 16), dtype=jnp.float32)

    decoder = BaseDecoder()

    # 1) Semantics check: forward must raise NotImplementedError.
    try:
        decoder.forward(x)
        raise AssertionError("BaseDecoder.forward should have raised")
    except NotImplementedError:
        pass

    # 2) Optimal identity path: zero-cost pass-through (no copy at all).
    y_fast = decoder._stub_pass_through(x)
    assert y_fast is x

    # 3) Run the Pallas DMA-copy template once and verify it round-trips.
    y = decoder._pallas_template(x)
    jax.block_until_ready(y)
    assert y.shape == x.shape and y.dtype == x.dtype
    assert bool(jnp.all(y == x))

    print("KERNEL_OK")
</pallas_src>

<mosaic_0001>
module attributes {stable_mosaic.version = 11 : i64} {
  func.func @_dma_copy_kernel(%arg0: memref<2x4x16x16xf32, #tpu.memory_space<any>>, %arg1: memref<2x4x16x16xf32, #tpu.memory_space<any>>, %arg2: memref<!tpu.dma_semaphore, #tpu.memory_space<semaphore_mem>>) attributes {dimension_semantics = [], scalar_prefetch = 0 : i64, scratch_operands = 1 : i64, tpu.core_type = #tpu.core_type<tc>} {
    tpu.enqueue_dma source(%arg0 : memref<2x4x16x16xf32, #tpu.memory_space<any>>) target(%arg1 : memref<2x4x16x16xf32, #tpu.memory_space<any>>) target_semaphore(%arg2 : memref<!tpu.dma_semaphore, #tpu.memory_space<semaphore_mem>>)
    tpu.wait_dma2 semaphore(%arg2 : memref<!tpu.dma_semaphore, #tpu.memory_space<semaphore_mem>>) src(%arg0 : memref<2x4x16x16xf32, #tpu.memory_space<any>>) dst(%arg1 : memref<2x4x16x16xf32, #tpu.memory_space<any>>)
    return
  }
}

</mosaic_0001>

<bundles_post_ra>
// kernel: _pallas_identity_template.1
= control target key start
LH: loop header
LB: loop body
LE: loop exit
PB: predicated region body
PF: predicated region fallthrough
CT: control target
= control target key end

     0   :  { %s36_s6 = smov [#allocation2]   ;;  %s37_s7 = smov [#allocation3]   ;;  %s55_s0 = inlined_call_operand.hbm [shape: f32[2,4,16,16], index: 0, kind: input, shape index: {}]   ;;  %s56_s1 = inlined_call_operand.hbm [shape: f32[2,4,16,16], index: 1, kind: output, shape index: {}]  }
   0x1   :  { %s38_s8 = smov 0  }
   0x2   :  { %18 = dma.general %s55_s0, 2048, %s56_s1, %s36_s6, %s37_s7, [#allocation4], %s38_s8, 0  }
   0x3   :  { %34 = dma.done.wait [#allocation2], 2048 }
   0x4   :  { %35 = vsyncadd [#allocation2], 4294965248 }
   0x5   :  { %24 = vsyncmov [#allocation2] }
   0x8   :  { %s25_s13 = vpop.sfrf %24 }
   0x9   :  { %p30_p0 = scmp.ne.s32.totalorder %s25_s13, 0 }
   0xb   :  { %29 = shalt.err (%p30_p0)  }

</bundles_post_ra>
